<compile_context>
chip_gen: v7x
topology: tpu7x:2x2x1
jax: 0.10.0
libtpu: 0.0.40
codegen_flags: <defaults>
</compile_context>

<pallas_src>
import functools

import jax
import jax.numpy as jnp
from jax.experimental import pallas as pl
from jax.experimental.pallas import tpu as pltpu

LANE = 128
SUBLANE = 8


def _round_up(x, m):
    return (x + m - 1) // m * m


def _make_policy_kernel(action_dim):
    def kernel(x_ref, w1_ref, b1_ref, w2_ref, b2_ref, w3_ref, b3_ref, out_ref):
        x = x_ref[...]

        # l1 + relu
        h1 = jnp.dot(x, w1_ref[...], preferred_element_type=jnp.float32) + b1_ref[...]
        h1 = jnp.maximum(h1, 0.0)

        # l2 + relu
        h2 = jnp.dot(h1, w2_ref[...], preferred_element_type=jnp.float32) + b2_ref[...]
        h2 = jnp.maximum(h2, 0.0)

        # fused head: columns [0, A) = mean, [A, 2A) = log_std (no column pad)
        y = jnp.dot(h2, w3_ref[...], preferred_element_type=jnp.float32) + b3_ref[...]
        col = jax.lax.broadcasted_iota(jnp.int32, y.shape, 1)
        out_ref[...] = jnp.where(col >= action_dim, jnp.clip(y, -20.0, 2.0), y)

    return kernel


@functools.partial(jax.jit, static_argnames=("action_dim",))
def policy_net_forward(state, packed, *, action_dim):
    """state: (B, state_dim) f32; packed: dict from pack_policy_params."""
    B, S = state.shape
    H_pad = packed["w1"].shape[1]
    O = packed["w3"].shape[1]  # == 2 * action_dim (unpadded)

    # Batch tiling: aim for ~1024-row tiles (amortizes per-grid-step overhead,
    # ~85-86% of HBM roofline), keep batch padding to a handful of rows, and
    # force >= 2 grid steps when possible so v7x megacore sharding has work
    # for both TensorCores.  VMEM footprint is tiny (128-wide f32 tiles).
    TB_MAX = 1024
    B8 = _round_up(B, SUBLANE)
    n_steps = pl.cdiv(B8, TB_MAX)
    if B8 >= 2 * SUBLANE:
        n_steps = max(n_steps, 2)
    TB = _round_up(pl.cdiv(B8, n_steps), SUBLANE)
    B_pad = n_steps * TB

    x = state
    if B_pad != B:
        x = jnp.pad(x, ((0, B_pad - B), (0, 0)))

    grid = (n_steps,)

    flops = 2 * B_pad * (S * H_pad + H_pad * H_pad + H_pad * O)
    bytes_accessed = 4 * (
        B_pad * S + B_pad * O                       # streamed activations in/out
        + S * H_pad + H_pad * H_pad + H_pad * O     # resident weights
        + 2 * H_pad + O                             # resident biases
    )

    out = pl.pallas_call(
        _make_policy_kernel(action_dim),
        out_shape=jax.ShapeDtypeStruct((B_pad, O), jnp.float32),
        grid=grid,
        in_specs=[
            pl.BlockSpec((TB, S), lambda i: (i, 0)),        # x: tiled on batch
            pl.BlockSpec((S, H_pad), lambda i: (0, 0)),     # weights / biases:
            pl.BlockSpec((1, H_pad), lambda i: (0, 0)),     # constant block ->
            pl.BlockSpec((H_pad, H_pad), lambda i: (0, 0)), # resident in VMEM
            pl.BlockSpec((1, H_pad), lambda i: (0, 0)),
            pl.BlockSpec((H_pad, O), lambda i: (0, 0)),
            pl.BlockSpec((1, O), lambda i: (0, 0)),
        ],
        out_specs=pl.BlockSpec((TB, O), lambda i: (i, 0)),
        compiler_params=pltpu.CompilerParams(
            dimension_semantics=("parallel",),
        ),
        cost_estimate=pl.CostEstimate(
            flops=flops, transcendentals=0, bytes_accessed=bytes_accessed
        ),
    )(
        x,
        packed["w1"], packed["b1"],
        packed["w2"], packed["b2"],
        packed["w3"], packed["b3"],
    )

    mean = out[:B, :action_dim]
    log_std = out[:B, action_dim:]
    return mean, log_std


def xavier_uniform(key, fan_in, fan_out):
    # matches torch.nn.init.xavier_uniform_ (gain=1)
    limit = jnp.sqrt(6.0 / (fan_in + fan_out))
    # stored as (in, out) = transpose of the torch (out, in) weight
    return jax.random.uniform(key, (fan_in, fan_out), jnp.float32, -limit, limit)


def init_policy_params(key, state_dim, action_dim, hidden_dim):
    k1, k2, k3, k4 = jax.random.split(key, 4)
    return {
        "w1": xavier_uniform(k1, state_dim, hidden_dim),
        "b1": jnp.zeros((1, hidden_dim), jnp.float32),
        "w2": xavier_uniform(k2, hidden_dim, hidden_dim),
        "b2": jnp.zeros((1, hidden_dim), jnp.float32),
        "w3m": xavier_uniform(k3, hidden_dim, action_dim),
        "b3m": jnp.zeros((1, action_dim), jnp.float32),
        "w3lsd": xavier_uniform(k4, hidden_dim, action_dim),
        "b3lsd": jnp.zeros((1, action_dim), jnp.float32),
    }


def pack_policy_params(params):
    """Fuse the two heads; zero-pad ONLY the hidden dim to a multiple of 128.

    The streamed dims (state_dim, 2*action_dim) are left at their true sizes.
    Zero padding of the hidden dim is exact: padded h1/h2 columns are
    relu(0) = 0 and multiply zero weight rows downstream.
    """
    state_dim, hidden_dim = params["w1"].shape
    action_dim = params["w3m"].shape[1]
    H_pad = _round_up(hidden_dim, LANE)

    def pad2(a, rows, cols):
        return jnp.pad(a, ((0, rows - a.shape[0]), (0, cols - a.shape[1])))

    w3 = jnp.concatenate([params["w3m"], params["w3lsd"]], axis=1)
    b3 = jnp.concatenate([params["b3m"], params["b3lsd"]], axis=1)

    return {
        "w1": pad2(params["w1"], state_dim, H_pad),
        "b1": pad2(params["b1"], 1, H_pad),
        "w2": pad2(params["w2"], H_pad, H_pad),
        "b2": pad2(params["b2"], 1, H_pad),
        "w3": pad2(w3, H_pad, 2 * action_dim),
        "b3": b3,
    }


def policy_net_forward_ref(state, params):
    """Pure-JAX reference for correctness checking (unpadded, unfused)."""
    h1 = jnp.maximum(state @ params["w1"] + params["b1"], 0.0)
    h2 = jnp.maximum(h1 @ params["w2"] + params["b2"], 0.0)
    mean = h2 @ params["w3m"] + params["b3m"]
    log_std = jnp.clip(h2 @ params["w3lsd"] + params["b3lsd"], -20.0, 2.0)
    return mean, log_std


def _check(state, params, packed, action_dim):
    mean, log_std = policy_net_forward(state, packed, action_dim=action_dim)
    jax.block_until_ready((mean, log_std))
    mean_ref, log_std_ref = policy_net_forward_ref(state, params)
    assert mean.shape == mean_ref.shape and log_std.shape == log_std_ref.shape
    assert jnp.allclose(mean, mean_ref, atol=1e-5, rtol=1e-5)
    assert jnp.allclose(log_std, log_std_ref, atol=1e-5, rtol=1e-5)
    assert float(log_std.max()) <= 2.0 and float(log_std.min()) >= -20.0


if __name__ == "__main__":
    key = jax.random.PRNGKey(0)
    k_param, k_state1, k_state2 = jax.random.split(key, 3)

    state_dim, action_dim, hidden_dim = 8, 4, 32
    params = init_policy_params(k_param, state_dim, action_dim, hidden_dim)
    packed = pack_policy_params(params)

    # Small batch (single grid step).
    state_small = jax.random.normal(k_state1, (8, state_dim), jnp.float32)
    _check(state_small, params, packed, action_dim)

    # Larger non-8-divisible-into-1024 batch: exercises the divisor-aware
    # tiling (2 parallel grid steps of 520 rows, zero batch padding).
    state_big = jax.random.normal(k_state2, (1040, state_dim), jnp.float32)
    _check(state_big, params, packed, action_dim)

    print("KERNEL_OK")
</pallas_src>

<mosaic_0001>
module attributes {stable_mosaic.version = 11 : i64} {
  func.func @kernel(%arg0: i32, %arg1: memref<8x8xf32, #tpu.memory_space<vmem>>, %arg2: memref<8x128xf32, #tpu.memory_space<vmem>>, %arg3: memref<1x128xf32, #tpu.memory_space<vmem>>, %arg4: memref<128x128xf32, #tpu.memory_space<vmem>>, %arg5: memref<1x128xf32, #tpu.memory_space<vmem>>, %arg6: memref<128x8xf32, #tpu.memory_space<vmem>>, %arg7: memref<1x8xf32, #tpu.memory_space<vmem>>, %arg8: memref<8x8xf32, #tpu.memory_space<vmem>>) attributes {dimension_semantics = [#tpu.dimension_semantics<parallel>], iteration_bounds = array<i64: 1>, scalar_prefetch = 0 : i64, scratch_operands = 0 : i64, tpu.core_type = #tpu.core_type<tc>, window_params = [{transform_indices = @transform_0, window_bounds = array<i64: 8, 8>}, {pipeline_mode = #tpu.pipeline_mode<synchronous>, transform_indices = @transform_1, window_bounds = array<i64: 8, 128>}, {pipeline_mode = #tpu.pipeline_mode<synchronous>, transform_indices = @transform_2, window_bounds = array<i64: 1, 128>}, {pipeline_mode = #tpu.pipeline_mode<synchronous>, transform_indices = @transform_3, window_bounds = array<i64: 128, 128>}, {pipeline_mode = #tpu.pipeline_mode<synchronous>, transform_indices = @transform_4, window_bounds = array<i64: 1, 128>}, {pipeline_mode = #tpu.pipeline_mode<synchronous>, transform_indices = @transform_5, window_bounds = array<i64: 128, 8>}, {pipeline_mode = #tpu.pipeline_mode<synchronous>, transform_indices = @transform_6, window_bounds = array<i64: 1, 8>}, {transform_indices = @transform_7, window_bounds = array<i64: 8, 8>}]} {
    %c0 = arith.constant 0 : index
    %c0_0 = arith.constant 0 : index
    %0 = vector.load %arg1[%c0, %c0_0] : memref<8x8xf32, #tpu.memory_space<vmem>>, vector<8x8xf32>
    %c0_1 = arith.constant 0 : index
    %c0_2 = arith.constant 0 : index
    %1 = vector.load %arg2[%c0_1, %c0_2] : memref<8x128xf32, #tpu.memory_space<vmem>>, vector<8x128xf32>
    %cst = arith.constant dense<0.000000e+00> : vector<8x128xf32>
    %2 = tpu.matmul %0, %1, %cst {dimension_numbers = #tpu.dot_dimension_numbers<[1], [0], [0], [1], [0, 0, 1, 1], [], []>} : vector<8x8xf32>, vector<8x128xf32>, vector<8x128xf32> -> vector<8x128xf32>
    %c0_3 = arith.constant 0 : index
    %c0_4 = arith.constant 0 : index
    %3 = vector.load %arg3[%c0_3, %c0_4] : memref<1x128xf32, #tpu.memory_space<vmem>>, vector<1x128xf32>
    %4 = vector.broadcast %3 : vector<1x128xf32> to vector<8x128xf32>
    %5 = arith.addf %2, %4 : vector<8x128xf32>
    %cst_5 = arith.constant 0.000000e+00 : f32
    %6 = vector.broadcast %cst_5 : f32 to vector<8x128xf32>
    %7 = arith.maximumf %5, %6 : vector<8x128xf32>
    %c0_6 = arith.constant 0 : index
    %c0_7 = arith.constant 0 : index
    %8 = vector.load %arg4[%c0_6, %c0_7] : memref<128x128xf32, #tpu.memory_space<vmem>>, vector<128x128xf32>
    %cst_8 = arith.constant dense<0.000000e+00> : vector<8x128xf32>
    %9 = tpu.matmul %7, %8, %cst_8 {dimension_numbers = #tpu.dot_dimension_numbers<[1], [0], [0], [1], [0, 0, 1, 1], [], []>} : vector<8x128xf32>, vector<128x128xf32>, vector<8x128xf32> -> vector<8x128xf32>
    %c0_9 = arith.constant 0 : index
    %c0_10 = arith.constant 0 : index
    %10 = vector.load %arg5[%c0_9, %c0_10] : memref<1x128xf32, #tpu.memory_space<vmem>>, vector<1x128xf32>
    %11 = vector.broadcast %10 : vector<1x128xf32> to vector<8x128xf32>
    %12 = arith.addf %9, %11 : vector<8x128xf32>
    %cst_11 = arith.constant 0.000000e+00 : f32
    %13 = vector.broadcast %cst_11 : f32 to vector<8x128xf32>
    %14 = arith.maximumf %12, %13 : vector<8x128xf32>
    %c0_12 = arith.constant 0 : index
    %c0_13 = arith.constant 0 : index
    %15 = vector.load %arg6[%c0_12, %c0_13] : memref<128x8xf32, #tpu.memory_space<vmem>>, vector<128x8xf32>
    %cst_14 = arith.constant dense<0.000000e+00> : vector<8x8xf32>
    %16 = tpu.matmul %14, %15, %cst_14 {dimension_numbers = #tpu.dot_dimension_numbers<[1], [0], [0], [1], [0, 0, 1, 1], [], []>} : vector<8x128xf32>, vector<128x8xf32>, vector<8x8xf32> -> vector<8x8xf32>
    %c0_15 = arith.constant 0 : index
    %c0_16 = arith.constant 0 : index
    %17 = vector.load %arg7[%c0_15, %c0_16] : memref<1x8xf32, #tpu.memory_space<vmem>>, vector<1x8xf32>
    %18 = vector.broadcast %17 : vector<1x8xf32> to vector<8x8xf32>
    %19 = arith.addf %16, %18 : vector<8x8xf32>
    %20 = tpu.iota {dimensions = array<i32: 1>} : vector<8x8xi32>
    %c4_i32 = arith.constant 4 : i32
    %21 = vector.broadcast %c4_i32 : i32 to vector<8x8xi32>
    %22 = arith.cmpi sge, %20, %21 : vector<8x8xi32>
    %cst_17 = arith.constant -2.000000e+01 : f32
    %cst_18 = arith.constant 2.000000e+00 : f32
    %23 = vector.broadcast %cst_17 : f32 to vector<8x8xf32>
    %24 = arith.maximumf %23, %19 : vector<8x8xf32>
    %25 = vector.broadcast %cst_18 : f32 to vector<8x8xf32>
    %26 = arith.minimumf %25, %24 : vector<8x8xf32>
    %27 = arith.select %22, %26, %19 : vector<8x8xi1>, vector<8x8xf32>
    %c0_19 = arith.constant 0 : index
    %c0_20 = arith.constant 0 : index
    %28 = vector.load %arg8[%c0_19, %c0_20] : memref<8x8xf32, #tpu.memory_space<vmem>>, vector<8x8xf32>
    tpu.vector_store %arg8[%c0_19, %c0_20], %27 {strides = array<i32>} : memref<8x8xf32, #tpu.memory_space<vmem>>, vector<8x8xf32>,
    return
  }
  func.func @transform_0(%arg0: i32) -> (i32, i32) {
    %c0_i32 = arith.constant 0 : i32
    %c0_i32_0 = arith.constant 0 : i32
    return %arg0, %c0_i32 : i32, i32
  }
  func.func @transform_1(%arg0: i32) -> (i32, i32) {
    %c0_i32 = arith.constant 0 : i32
    %c0_i32_0 = arith.constant 0 : i32
    %c0_i32_1 = arith.constant 0 : i32
    return %c0_i32, %c0_i32_0 : i32, i32
  }
  func.func @transform_2(%arg0: i32) -> (i32, i32) {
    %c0_i32 = arith.constant 0 : i32
    %c0_i32_0 = arith.constant 0 : i32
    %c0_i32_1 = arith.constant 0 : i32
    return %c0_i32, %c0_i32_0 : i32, i32
  }
  func.func @transform_3(%arg0: i32) -> (i32, i32) {
    %c0_i32 = arith.constant 0 : i32
    %c0_i32_0 = arith.constant 0 : i32
    %c0_i32_1 = arith.constant 0 : i32
    return %c0_i32, %c0_i32_0 : i32, i32
  }
  func.func @transform_4(%arg0: i32) -> (i32, i32) {
    %c0_i32 = arith.constant 0 : i32
    %c0_i32_0 = arith.constant 0 : i32
    %c0_i32_1 = arith.constant 0 : i32
    return %c0_i32, %c0_i32_0 : i32, i32
  }
  func.func @transform_5(%arg0: i32) -> (i32, i32) {
    %c0_i32 = arith.constant 0 : i32
    %c0_i32_0 = arith.constant 0 : i32
    %c0_i32_1 = arith.constant 0 : i32
    return %c0_i32, %c0_i32_0 : i32, i32
  }
  func.func @transform_6(%arg0: i32) -> (i32, i32) {
    %c0_i32 = arith.constant 0 : i32
    %c0_i32_0 = arith.constant 0 : i32
    %c0_i32_1 = arith.constant 0 : i32
    return %c0_i32, %c0_i32_0 : i32, i32
  }
  func.func @transform_7(%arg0: i32) -> (i32, i32) {
    %c0_i32 = arith.constant 0 : i32
    %c0_i32_0 = arith.constant 0 : i32
    return %arg0, %c0_i32 : i32, i32
  }
}

</mosaic_0001>

<bundles_post_ra>
// kernel: policy_net_forward.1
= control target key start
LH: loop header
LB: loop body
LE: loop exit
PB: predicated region body
PF: predicated region fallthrough
CT: control target
= control target key end

     0   :  { %vm35_vm0 = vcmask 64512   ;;  %v474_v0 = vmov 0.0   ;;  %vm475_vm1 = vmmov 0   ;;  %v476_v4 = vmov 0.0|0.0   ;;  %s649_s1 = inlined_call_operand.vmem [shape: f32[8,128], index: 1, kind: input, shape index: {}]   ;;  %s650_s0 = inlined_call_operand.vmem [shape: f32[8,8], index: 0, kind: input, shape index: {}]   ;;  %s651_s3 = inlined_call_operand.vmem [shape: f32[128,128], index: 3, kind: input, shape index: {}]   ;;  %s652_s5 = inlined_call_operand.vmem [shape: f32[128,8], index: 5, kind: input, shape index: {}]   ;;  %s653_s2 = inlined_call_operand.vmem [shape: f32[1,128], index: 2, kind: input, shape index: {}]   ;;  %s654_s4 = inlined_call_operand.vmem [shape: f32[1,128], index: 4, kind: input, shape index: {}]   ;;  %s655_s6 = inlined_call_operand.vmem [shape: f32[1,8], index: 6, kind: input, shape index: {}]   ;;  %s656_s7 = inlined_call_operand.vmem [shape: f32[8,8], index: 7, kind: output, shape index: {}]  }
   0x1   :  { %348 = vmatprep.subr.mxu0 %v474_v0  ;;  %v27_v1 = vld [vmem:[%s649_s1] sm:$0xff]  ;;  %350 = vmatprep.mubr.msk.f32.mxu0 %vm475_vm1, %v474_v0  ;;  %v111_v5 = vld [vmem:[%s651_s3 + $0x8] sm:$0xff]  ;;  %v112_v6 = vld [vmem:[%s651_s3 + $0x10] sm:$0xff]  ;;  %v297_v62 = vlaneseq }
   0x2   :  { %v26_v2 = vld [vmem:[%s650_s0] sm:$0xff]  ;;  %349 = vmatpush3.msra.mxu0 %v27_v1  ;;  %423 = vmatprep.subr.bf16.mxu1 %v476_v4  ;;  %v113_v7 = vld [vmem:[%s651_s3 + $0x18] sm:$0xff]  ;;  %v115_v11 = vld [vmem:[%s651_s3 + $0x28] sm:$0xff] }
   0x3   :  { %v110_v3 = vld [vmem:[%s651_s3] sm:$0xff]  ;;  %351 = vmatmul.mubr.msk.f32.vlgmr.msra.gmra.mrb[0].mxu0 %vm35_vm0, %v26_v2  ;;  %385 = vmatprep.mubr.msk.f32.mxu1 %vm475_vm1, %v474_v0  ;;  %v427_v9 = vpack.c.bf16 %v113_v7, %v112_v6  ;;  %v116_v13 = vld [vmem:[%s651_s3 + $0x30] sm:$0xff]  ;;  %v117_v14 = vld [vmem:[%s651_s3 + $0x38] sm:$0xff]  ;;  %v298_v1 = vand.u32 127, %v297_v62 }
   0x4   :  { %v424_v8 = vpack.c.bf16 %v111_v5, %v110_v3  ;;  %447 = vmatprep.subr.bf16.mxu0 %v476_v4  ;;  %420 = vmatprep.mubr.msk.f32.mxu0 %vm475_vm1, %v474_v0  ;;  %v114_v10 = vld [vmem:[%s651_s3 + $0x20] sm:$0xff]  ;;  %v433_v15 = vpack.c.bf16 %v117_v14, %v116_v13  ;;  %v119_v17 = vld [vmem:[%s651_s3 + $0x48] sm:$0xff]  ;;  %v120_v19 = vld [vmem:[%s651_s3 + $0x50] sm:$0xff] }
   0x5   :  { %v430_v12 = vpack.c.bf16 %v115_v11, %v114_v10  ;;  %v118_v16 = vld [vmem:[%s651_s3 + $0x40] sm:$0xff]  ;;  %v121_v20 = vld [vmem:[%s651_s3 + $0x58] sm:$0xff]  ;;  %v123_v23 = vld [vmem:[%s651_s3 + $0x68] sm:$0xff]  ;;  %vm299_vm2 = vcmp.ge.s32.totalorder %v298_v1, 4 }
   0x6   :  { %425 = vmatpush3.bf16.msra.mxu1 %v424_v8  ;;  %v436_v18 = vpack.c.bf16 %v119_v17, %v118_v16  ;;  %v439_v21 = vpack.c.bf16 %v121_v20, %v120_v19  ;;  %v122_v22 = vld [vmem:[%s651_s3 + $0x60] sm:$0xff]  ;;  %v124_v25 = vld [vmem:[%s651_s3 + $0x70] sm:$0xff]  ;;  %v125_v26 = vld [vmem:[%s651_s3 + $0x78] sm:$0xff] }
   0x7   :  { %426 = vmatprep.subr.bf16.mxu1 %v476_v4  ;;  %v442_v24 = vpack.c.bf16 %v123_v23, %v122_v22  ;;  %v445_v27 = vpack.c.bf16 %v125_v26, %v124_v25  ;;  %v204_v28 = vld [vmem:[%s652_s5] sm:$0xff]  ;;  %v205_v29 = vld [vmem:[%s652_s5 + $0x8] sm:$0xff]  ;;  %v206_v30 = vld [vmem:[%s652_s5 + $0x10] sm:$0xff] }
   0x8   :  { %v448_v31 = vpack.c.bf16 %v205_v29, %v204_v28  ;;  %v207_v32 = vld [vmem:[%s652_s5 + $0x18] sm:$0xff]  ;;  %v208_v34 = vld [vmem:[%s652_s5 + $0x20] sm:$0xff]  ;;  %v209_v35 = vld [vmem:[%s652_s5 + $0x28] sm:$0xff] }
   0x9   :  { %v451_v33 = vpack.c.bf16 %v207_v32, %v206_v30  ;;  %v454_v36 = vpack.c.bf16 %v209_v35, %v208_v34  ;;  %v210_v37 = vld [vmem:[%s652_s5 + $0x30] sm:$0xff]  ;;  %v211_v38 = vld [vmem:[%s652_s5 + $0x38] sm:$0xff]  ;;  %v212_v40 = vld [vmem:[%s652_s5 + $0x40] sm:$0xff] }
   0xa   :  { %428 = vmatpush3.bf16.msra.mxu1 %v427_v9  ;;  %449 = vmatpush3.bf16.msra.mxu0 %v448_v31  ;;  %v457_v39 = vpack.c.bf16 %v211_v38, %v210_v37  ;;  %v213_v41 = vld [vmem:[%s652_s5 + $0x48] sm:$0xff]  ;;  %v214_v43 = vld [vmem:[%s652_s5 + $0x50] sm:$0xff]  ;;  %v215_v44 = vld [vmem:[%s652_s5 + $0x58] sm:$0xff] }
   0xb   :  { %429 = vmatprep.subr.bf16.mxu1 %v476_v4  ;;  %450 = vmatprep.subr.bf16.mxu0 %v476_v4  ;;  %v460_v42 = vpack.c.bf16 %v213_v41, %v212_v40  ;;  %v463_v45 = vpack.c.bf16 %v215_v44, %v214_v43  ;;  %v216_v46 = vld [vmem:[%s652_s5 + $0x60] sm:$0xff]  ;;  %v217_v47 = vld [vmem:[%s652_s5 + $0x68] sm:$0xff]  ;;  %v218_v54 = vld [vmem:[%s652_s5 + $0x70] sm:$0xff] }
   0xc   :  { %v466_v48 = vpack.c.bf16 %v217_v47, %v216_v46  ;;  %v308_v49 = vld [vmem:[%s653_s2] ss:$0 sm:$0xff]  ;;  %v219_v55 = vld [vmem:[%s652_s5 + $0x78] sm:$0xff] }
   0xd   :  { %v469_v56 = vpack.c.bf16 %v219_v55, %v218_v54  ;;  %v310_v57 = vld [vmem:[%s654_s4] ss:$0 sm:$0xff] }
   0xe   :  { %431 = vmatpush3.bf16.msra.mxu1 %v430_v12  ;;  %452 = vmatpush3.bf16.msra.mxu0 %v451_v33  ;;  %v311_v63 = vld [vmem:[%s655_s6] ss:$0 sm:$0xff] }
   0xf   :  { %432 = vmatprep.subr.bf16.mxu1 %v476_v4  ;;  %453 = vmatprep.subr.bf16.mxu0 %v476_v4 }
  0x12   :  { %434 = vmatpush3.bf16.msra.mxu1 %v433_v15  ;;  %455 = vmatpush3.bf16.msra.mxu0 %v454_v36 }
  0x13   :  { %435 = vmatprep.subr.bf16.mxu1 %v476_v4  ;;  %456 = vmatprep.subr.bf16.mxu0 %v476_v4 }
  0x16   :  { %437 = vmatpush3.bf16.msra.mxu1 %v436_v18  ;;  %458 = vmatpush3.bf16.msra.mxu0 %v457_v39 }
  0x17   :  { %438 = vmatprep.subr.bf16.mxu1 %v476_v4  ;;  %459 = vmatprep.subr.bf16.mxu0 %v476_v4 }
  0x1a   :  { %440 = vmatpush3.bf16.msra.mxu1 %v439_v21  ;;  %461 = vmatpush3.bf16.msra.mxu0 %v460_v42 }
  0x1b   :  { %441 = vmatprep.subr.bf16.mxu1 %v476_v4  ;;  %462 = vmatprep.subr.bf16.mxu0 %v476_v4 }
  0x1e   :  { %443 = vmatpush3.bf16.msra.mxu1 %v442_v24  ;;  %464 = vmatpush3.bf16.msra.mxu0 %v463_v45 }
  0x1f   :  { %444 = vmatprep.subr.bf16.mxu1 %v476_v4  ;;  %465 = vmatprep.subr.bf16.mxu0 %v476_v4 }
  0x22   :  { %446 = vmatpush3.bf16.msra.mxu1 %v445_v27  ;;  %467 = vmatpush3.bf16.msra.mxu0 %v466_v48 }
  0x23   :  { %468 = vmatprep.subr.bf16.mxu0 %v476_v4 }
  0x26   :  { %470 = vmatpush3.bf16.msra.mxu0 %v469_v56 }
  0xd6   :  { %v105_v50 = vpop.f32.mrb[0].mxu0 }
  0xd7   :  { %v106_v51 = vadd.f32 %v308_v49, %v105_v50  ;;  %v352_v52 = vpop.f32.mrb[1].mxu0 }
  0xd9   :  { %v109_v53 = vmax.f32 %v106_v51, 0.0 }
  0xdb   :  { %386 = vmatmul.mubr.f32.vlgmr.msra.gmra.mrb[0].mxu1 %v109_v53 }
 0x1ae   :  { %v199_v58 = vpop.f32.mrb[0].mxu1 }
 0x1af   :  { %v200_v59 = vadd.f32 %v310_v57, %v199_v58  ;;  %v387_v60 = vpop.f32.mrb[1].mxu1 }
 0x1b1   :  { %v203_v61 = vmax.f32 %v200_v59, 0.0 }
 0x1b3   :  { %421 = vmatmul.mubr.f32.vlgmr.msra.gmra.mrb[2].mxu0 %v203_v61 }
 0x286   :  { %v293_v0 = vpop.f32.mrb[2].mxu0 }
 0x287   :  { %v294_v2 = vadd.f32 %v311_v63, %v293_v0  ;;  %v422_v3 = vpop.f32.mrb[3].mxu0 }
 0x289   :  { %v300_v4 = vmax.f32 %v294_v2, -20.0 }
 0x28b   :  { %v301_v5 = vmin.f32 %v300_v4, 2.0 }
 0x28d   :  { %v302_v6 = vsel %vm299_vm2, %v301_v5, %v294_v2 }
 0x28e   :  { %303 = vst.msk [vmem:[%s656_s7] sm:$0xff] %vm35_vm0, %v302_v6 }

</bundles_post_ra>
